<compile_context>
chip_gen: v7x
topology: tpu7x:2x2x1
jax: 0.10.0
libtpu: 0.0.40
codegen_flags: <defaults>
</compile_context>

<pallas_src>
import functools

import jax
import jax.numpy as jnp
from jax.experimental import pallas as pl
from jax.experimental.pallas import tpu as pltpu


def _round_up(a: int, b: int) -> int:
    return (a + b - 1) // b * b


def _vmem_capacity_bytes() -> int:
    """Physical VMEM per core; conservative fallback (v7x = 64 MiB) if unavailable."""
    try:
        return int(pltpu.get_tpu_info().vmem_capacity_bytes)
    except Exception:
        return 64 * 1024 * 1024


def _select_tiles(M: int, H: int, x_bytes: int, out_bytes: int):
    """Pick (tm, tn, vmem_limit_bytes) from shape + per-generation VMEM capacity."""
    vmem_cap = _vmem_capacity_bytes()
    budget = int(vmem_cap * 0.75)                 # headroom for Mosaic internals

    # --- tn: largest multiple of 128 dividing H, capped; tn == H when H % 128 != 0.
    if H % 128 != 0:
        tn = H
    else:
        decode = M <= 256                         # single-M-tile (decode-shaped) call
        tn_cap = min(1024 if decode else 512, H)
        if H >= 256:
            tn_cap = min(tn_cap, H // 2)          # keep >=2 N tiles (v7x megacore split)
        tn = 128
        t = 256
        while t <= tn_cap:
            if H % t == 0 and 2 * H * t * 2 <= budget // 2:   # weight slab within budget
                tn = t
            t += 128

    # --- tm: as large as the double-buffered working set allows (fewer weight
    #         re-reads at prefill), then balanced across M tiles to avoid pad waste.
    w_bytes = 2 * H * tn * 2                      # double-buffered bf16 (H, tn) weight
    b_bytes = 2 * H * 4                           # bias row (fetched once; conservative)

    def fits(tm_c: int) -> bool:
        x_b = 2 * tm_c * H * x_bytes              # x is double-buffered by BlockSpec
        o_b = 2 * tm_c * tn * out_bytes
        return w_bytes + b_bytes + x_b + o_b <= budget

    tm_cap = 8
    for cand in (1024, 512, 256, 128, 64, 32, 16, 8):
        if fits(cand):
            tm_cap = cand
            break
    tm_cap = max(8, min(tm_cap, _round_up(M, 8)))
    n_m_tiles = pl.cdiv(M, tm_cap)
    tm = _round_up(pl.cdiv(M, n_m_tiles), 8)      # balanced tiles -> minimal padding

    working = w_bytes + b_bytes + 2 * tm * H * x_bytes + 2 * tm * tn * out_bytes
    vmem_limit = int(min(vmem_cap, max(working + (8 << 20), 32 << 20)))
    return tm, tn, vmem_limit


def _resblock_kernel(x_ref, w_ref, b_ref, o_ref, *, tn: int, n_tiles: int):
    # x_ref: (tm, H)  f32 activations (also the residual source, sliced per N tile)
    # w_ref: (H, tn)  bf16 weight, K-major (pre-transposed once outside the hot path)
    # b_ref: (1, H)   f32 bias, fetched once (constant block index)
    # o_ref: (tm, tn)
    x = x_ref[...]
    h = jnp.dot(x.astype(jnp.bfloat16), w_ref[...],
                preferred_element_type=jnp.float32)          # bf16 MXU, f32 accumulate
    if n_tiles == 1:
        bias = b_ref[...]
        res = x.astype(jnp.float32)
    else:
        j = pl.program_id(1)
        col = pl.multiple_of(j * tn, 128)                    # tn % 128 == 0 here
        bias = b_ref[:, pl.ds(col, tn)]
        res = x_ref[:, pl.ds(col, tn)].astype(jnp.float32)   # lane-aligned slice
    h = h + bias
    silu = h * jax.nn.sigmoid(h)                             # f32 on VPU/EUP
    o_ref[...] = (res + silu).astype(o_ref.dtype)


def prepare_resblock_params(weight, bias):
    """One-time parameter prep (outside the hot path): torch (out, in) weight ->
    K-major (in, out) bf16 (canonical MXU contraction, no per-tile transpose, half
    the weight HBM traffic) and an f32 (1, H) bias row."""
    w_km = jnp.asarray(weight, jnp.float32).T                # (in_features, out_features)
    return (w_km.astype(jnp.bfloat16),
            jnp.asarray(bias, jnp.float32).reshape(1, -1))


@jax.jit
def resblock(x, w_km_bf16, bias_row):
    """x: (M, H) f32; w_km_bf16: (H, H) K-major bf16; bias_row: (1, H) f32."""
    M, H = x.shape
    tm, tn, vmem_limit = _select_tiles(M, H, x.dtype.itemsize, x.dtype.itemsize)
    m_pad = _round_up(M, tm)
    x_pad = x if m_pad == M else jnp.pad(x, ((0, m_pad - M), (0, 0)))
    grid = (m_pad // tm, H // tn)                            # N (weight stream) inner

    kernel = functools.partial(_resblock_kernel, tn=tn, n_tiles=grid[1])
    out = pl.pallas_call(
        kernel,
        out_shape=jax.ShapeDtypeStruct((m_pad, H), x.dtype),
        grid_spec=pltpu.PrefetchScalarGridSpec(
            num_scalar_prefetch=0,
            grid=grid,
            in_specs=[
                # x: full contraction width, constant over inner j -> fetched once per
                # M tile (double buffer is accounted for in the VMEM budget above).
                pl.BlockSpec((tm, H), lambda i, j: (i, 0)),
                # bf16 K-major weight slab, streamed over j.
                pl.BlockSpec((H, tn), lambda i, j: (0, j)),
                # bias: constant block index -> DMA'd once per call.
                pl.BlockSpec((1, H), lambda i, j: (0, 0)),
            ],
            out_specs=pl.BlockSpec((tm, tn), lambda i, j: (i, j)),
        ),
        compiler_params=pltpu.CompilerParams(
            dimension_semantics=("parallel", "parallel"),
            vmem_limit_bytes=vmem_limit),
    )(x_pad, w_km_bf16, bias_row)

    return out[:M] if m_pad != M else out


def resblock_ref(x, weight, bias):
    h = x @ weight.T + bias
    return x + h * jax.nn.sigmoid(h)


if __name__ == "__main__":
    key = jax.random.PRNGKey(0)
    k_x, k_b, k_w, k_b2, k_x2 = jax.random.split(key, 5)

    # --- Test 1: module-faithful init (zeroed weight, default-uniform bias), small ---
    batch, seq, hidden = 2, 8, 32
    weight = jnp.zeros((hidden, hidden), jnp.float32)        # torch.nn.init.zeros_
    bound = 1.0 / (hidden ** 0.5)
    bias = jax.random.uniform(k_b, (hidden,), jnp.float32, -bound, bound)
    x = jax.random.normal(k_x, (batch, seq, hidden), jnp.float32)
    x2d = x.reshape(batch * seq, hidden)

    w_p, b_p = prepare_resblock_params(weight, bias)
    out = jax.block_until_ready(resblock(x2d, w_p, b_p))
    ref = resblock_ref(x2d, weight, bias)
    assert out.shape == x2d.shape
    assert jnp.allclose(out, ref, atol=1e-5, rtol=1e-5), "test1 mismatch vs reference"
    _ = out.reshape(batch, seq, hidden)                      # module-shaped output

    # --- Test 2: random weight, multi N-tile grid + ragged-M padding path ---
    hidden2, m2 = 256, 300                                   # H % 128 == 0, M % 8 != 0
    weight2 = jax.random.normal(k_w, (hidden2, hidden2), jnp.float32) / (hidden2 ** 0.5)
    bias2 = jax.random.uniform(k_b2, (hidden2,), jnp.float32, -0.02, 0.02)
    x2 = jax.random.normal(k_x2, (m2, hidden2), jnp.float32)
    w2_p, b2_p = prepare_resblock_params(weight2, bias2)
    out2 = jax.block_until_ready(resblock(x2, w2_p, b2_p))
    ref2 = resblock_ref(x2, weight2, bias2)
    assert out2.shape == (m2, hidden2)
    assert jnp.allclose(out2, ref2, atol=2e-2, rtol=2e-2), "test2 mismatch vs reference"

    print("KERNEL_OK")
</pallas_src>

<mosaic_0001>
module attributes {stable_mosaic.version = 11 : i64} {
  func.func @_resblock_kernel(%arg0: i32, %arg1: i32, %arg2: memref<16x32xf32, #tpu.memory_space<vmem>>, %arg3: memref<32x32xbf16, #tpu.memory_space<vmem>>, %arg4: memref<1x32xf32, #tpu.memory_space<vmem>>, %arg5: memref<16x32xf32, #tpu.memory_space<vmem>>) attributes {dimension_semantics = [#tpu.dimension_semantics<parallel>, #tpu.dimension_semantics<parallel>], iteration_bounds = array<i64: 1, 1>, scalar_prefetch = 0 : i64, scratch_operands = 0 : i64, tpu.core_type = #tpu.core_type<tc>, window_params = [{transform_indices = @transform_0, window_bounds = array<i64: 16, 32>}, {transform_indices = @transform_1, window_bounds = array<i64: 32, 32>}, {pipeline_mode = #tpu.pipeline_mode<synchronous>, transform_indices = @transform_2, window_bounds = array<i64: 1, 32>}, {transform_indices = @transform_3, window_bounds = array<i64: 16, 32>}]} {
    %c0 = arith.constant 0 : index
    %c0_0 = arith.constant 0 : index
    %0 = vector.load %arg2[%c0, %c0_0] : memref<16x32xf32, #tpu.memory_space<vmem>>, vector<16x32xf32>
    %1 = arith.truncf %0 : vector<16x32xf32> to vector<16x32xbf16>
    %c0_1 = arith.constant 0 : index
    %c0_2 = arith.constant 0 : index
    %2 = vector.load %arg3[%c0_1, %c0_2] : memref<32x32xbf16, #tpu.memory_space<vmem>>, vector<32x32xbf16>
    %cst = arith.constant dense<0.000000e+00> : vector<16x32xf32>
    %3 = tpu.matmul %1, %2, %cst {dimension_numbers = #tpu.dot_dimension_numbers<[1], [0], [0], [1], [0, 0, 1, 1], [], []>} : vector<16x32xbf16>, vector<32x32xbf16>, vector<16x32xf32> -> vector<16x32xf32>
    %c0_3 = arith.constant 0 : index
    %c0_4 = arith.constant 0 : index
    %4 = vector.load %arg4[%c0_3, %c0_4] : memref<1x32xf32, #tpu.memory_space<vmem>>, vector<1x32xf32>
    %5 = vector.broadcast %4 : vector<1x32xf32> to vector<16x32xf32>
    %6 = arith.addf %3, %5 : vector<16x32xf32>
    %7 = arith.negf %6 : vector<16x32xf32>
    %8 = math.exp %7 : vector<16x32xf32>
    %cst_5 = arith.constant 1.000000e+00 : f32
    %9 = vector.broadcast %cst_5 : f32 to vector<16x32xf32>
    %10 = arith.addf %9, %8 : vector<16x32xf32>
    %11 = arith.divf %9, %10 : vector<16x32xf32>
    %12 = arith.mulf %6, %11 : vector<16x32xf32>
    %13 = arith.addf %0, %12 : vector<16x32xf32>
    %c0_6 = arith.constant 0 : index
    %c0_7 = arith.constant 0 : index
    %14 = vector.load %arg5[%c0_6, %c0_7] : memref<16x32xf32, #tpu.memory_space<vmem>>, vector<16x32xf32>
    tpu.vector_store %arg5[%c0_6, %c0_7], %13 {strides = array<i32>} : memref<16x32xf32, #tpu.memory_space<vmem>>, vector<16x32xf32>,
    return
  }
  func.func @transform_0(%arg0: i32, %arg1: i32) -> (i32, i32) {
    %c0_i32 = arith.constant 0 : i32
    %c0_i32_0 = arith.constant 0 : i32
    return %arg0, %c0_i32 : i32, i32
  }
  func.func @transform_1(%arg0: i32, %arg1: i32) -> (i32, i32) {
    %c0_i32 = arith.constant 0 : i32
    %c0_i32_0 = arith.constant 0 : i32
    return %c0_i32, %arg1 : i32, i32
  }
  func.func @transform_2(%arg0: i32, %arg1: i32) -> (i32, i32) {
    %c0_i32 = arith.constant 0 : i32
    %c0_i32_0 = arith.constant 0 : i32
    %c0_i32_1 = arith.constant 0 : i32
    return %c0_i32, %c0_i32_0 : i32, i32
  }
  func.func @transform_3(%arg0: i32, %arg1: i32) -> (i32, i32) {
    %c0_i32 = arith.constant 0 : i32
    return %arg0, %arg1 : i32, i32
  }
}

</mosaic_0001>

<bundles_post_ra>
// kernel: resblock.1
= control target key start
LH: loop header
LB: loop body
LE: loop exit
PB: predicated region body
PF: predicated region fallthrough
CT: control target
= control target key end

     0   :  { %8 = vsyncpa [#allocation3], 0  ;;  %s336_s0 = inlined_call_operand.hbm [shape: f32[16,32], index: 0, kind: input, shape index: {}]   ;;  %s337_s1 = inlined_call_operand.hbm [shape: bf16[32,32], index: 1, kind: input, shape index: {}]   ;;  %s338_s2 = inlined_call_operand.vmem [shape: f32[1,32], index: 2, kind: input, shape index: {}]   ;;  %s339_s3 = inlined_call_operand.hbm [shape: f32[16,32], index: 3, kind: output, shape index: {}]  }
   0x1   :  { %9 = vsyncpa [#allocation6], 0 }
   0x2   :  { %10 = vsyncpa [#allocation4], 0  ;;  %s259_s12 = smov [#allocation2]   ;;  %s187_s16 = scalar_lea.hbm %s336_s0, 256 }
   0x3   :  { %s16_s13 = sshll.u32 %s259_s12, 4  ;;  %p188_p0 = scmp.ne.s32.totalorder %s336_s0, %s187_s16  ;;  %s17_s13 = int_to_ptr.vmem [resolvable:$true] %s16_s13 }
   0x4   :  { %p191_p1 = scmp.lt.u32.totalorder %s187_s16, %s336_s0 }
   0x6   :  { %p193_p2 = pnand %p191_p1, %p188_p0 }
   0x8   :  { %196 = shalt.err (!%p193_p2)
}
   0x9   :  { %s197_s21 = scalar_lea.vmem %s17_s13, 256  ;;  %p202_p4 = scmp.lt.s32.totalorder %s17_s13, %s17_s13 }
   0xa   :  { %p198_p3 = scmp.ne.s32.totalorder %s17_s13, %s197_s21  ;;  %p203_p5 = scmp.lt.s32.totalorder %s197_s21, %s197_s21 }
   0xc   :  { %p204_p6 = por %p203_p5, %p202_p4 }
   0xe   :  { %p205_p7 = pnand %p204_p6, %p198_p3 }
  0x10   :  { %208 = shalt.err (!%p205_p7)
}
  0x11   :  { %s260_s22 = smov 128   ;;  %s261_s23 = smov 8  }
  0x12   :  { %22 = dma.hbm_to_vmem [thread:$0]  %s336_s0, 256, %s17_s13, [#allocation3], %s260_s22, %s260_s22, %s261_s23  }
  0x13   :  { %s262_s26 = smov [#allocation5]   ;;  %s209_s30 = scalar_lea.hbm %s337_s1, 256 }
  0x14   :  { %s28_s27 = sshll.u32 %s262_s26, 4  ;;  %p210_p8 = scmp.ne.s32.totalorder %s337_s1, %s209_s30  ;;  %s29_s27 = int_to_ptr.vmem [resolvable:$true] %s28_s27 }
  0x15   :  { %p213_p9 = scmp.lt.u32.totalorder %s209_s30, %s337_s1 }
  0x17   :  { %p215_p10 = pnand %p213_p9, %p210_p8 }
  0x19   :  { %218 = shalt.err (!%p215_p10)
}
  0x1a   :  { %s219_s8 = scalar_lea.vmem %s29_s27, 256  ;;  %p224_p12 = scmp.lt.s32.totalorder %s29_s27, %s29_s27 }
  0x1b   :  { %p220_p11 = scmp.ne.s32.totalorder %s29_s27, %s219_s8  ;;  %p225_p13 = scmp.lt.s32.totalorder %s219_s8, %s219_s8 }
  0x1d   :  { %p226_p0 = por %p225_p13, %p224_p12 }
  0x1f   :  { %p227_p1 = pnand %p226_p0, %p220_p11 }
  0x21   :  { %230 = shalt.err (!%p227_p1)
}
  0x22   :  { %s263_s0 = smov 64   ;;  %s264_s9 = smov 4  }
  0x23   :  { %34 = dma.hbm_to_vmem [thread:$0]  %s337_s1, 256, %s29_s27, [#allocation6], %s263_s0, %s263_s0, %s264_s9  }
  0x24   :  { %253 = dma.done.wait [#allocation3], 256  }
  0x25   :  { %254 = vsyncadd [#allocation3], 4294967040 }
  0x26   :  { %255 = dma.done.wait [#allocation6], 256  }
  0x27   :  { %256 = vsyncadd [#allocation6], 4294967040  ;;  %v265_v0 = vmov 0.0   ;;  %vm266_vm0 = vmmov 0   ;;  %v177_v1 = vld [vmem:[#allocation5] sm:$0xff]   ;;  %v178_v2 = vld [vmem:[#allocation5 + $0x8] sm:$0xff]  }
  0x28   :  { %160 = vmatprep.subr.bf16.mxu0 %v265_v0  ;;  %164 = vmatprep.mubr.msk.bf16.mxu0 %vm266_vm0, %v265_v0  ;;  %v44_v3 = vld [vmem:[#allocation2] sm:$0xff]  ;;  %v45_v4 = vld [vmem:[#allocation2 + $0x8] sm:$0xff]  ;;  %vm70_vm1 = vcmask 261120  }
  0x29   :  { %161 = vmatpush3.bf16.msra.mxu0 %v177_v1  ;;  %v46_v5 = vpack.c.bf16 %v45_v4, %v44_v3  ;;  %v151_v6 = vld [vmem:[%s338_s2] ss:$0 sm:$0xff]  ;;  %s267_s2 = smov [#allocation7]  }
  0x2a   :  { %162 = vmatprep.subr.bf16.mxu0 %v265_v0  ;;  %s138_s13 = sshll.u32 %s267_s2, 4  ;;  %s139_s13 = int_to_ptr.vmem [resolvable:$true] %s138_s13 }
  0x2b   :  { %s231_s14 = scalar_lea.vmem %s139_s13, 256  ;;  %p236_p3 = scmp.lt.s32.totalorder %s139_s13, %s139_s13 }
  0x2c   :  { %p232_p2 = scmp.ne.s32.totalorder %s139_s13, %s231_s14  ;;  %p237_p4 = scmp.lt.s32.totalorder %s231_s14, %s231_s14 }
  0x2d   :  { %163 = vmatpush3.bf16.msra.mxu0 %v178_v2 }
  0x2e   :  { %p238_p5 = por %p237_p4, %p236_p3 }
  0x30   :  { %165 = vmatmul.mubr.msk.bf16.vlgmr.msra.gmra.mrb[0].mxu0 %vm70_vm1, %v46_v5  ;;  %p239_p6 = pnand %p238_p5, %p232_p2 }
 0x103   :  { %v108_v7 = vpop.f32.mrb[0].mxu0 }
 0x104   :  { %v109_v8 = vadd.f32 %v151_v6, %v108_v7  ;;  %v166_v9 = vpop.f32.mrb[1].mxu0 }
 0x105   :  { %v111_v10 = vpop.f32.mrb[2].mxu0 }
 0x106   :  { %v155_v11 = vmul.f32 -1.442695, %v109_v8  ;;  %v112_v12 = vadd.f32 %v151_v6, %v111_v10  ;;  %v167_v13 = vpop.f32.mrb[3].mxu0 }
 0x108   :  { %179 = vpow2.f32 %v155_v11  ;;  %v156_v14 = vmul.f32 -1.442695, %v112_v12 }
 0x10a   :  { %181 = vpow2.f32 %v156_v14 }
 0x112   :  { %v180_v15 = vpop.eup %179 }
 0x113   :  { %v121_v16 = vadd.f32 1.0, %v180_v15 }
 0x114   :  { %v182_v17 = vpop.eup %181 }
 0x115   :  { %183 = vrcp.f32 %v121_v16  ;;  %v122_v18 = vadd.f32 1.0, %v182_v17 }
 0x117   :  { %185 = vrcp.f32 %v122_v18 }
 0x11f   :  { %v184_v19 = vpop.eup %183 }
 0x120   :  { %v127_v20 = vmul.f32 %v184_v19, %v109_v8 }
 0x121   :  { %v186_v21 = vpop.eup %185 }
 0x122   :  { %v129_v22 = vadd.f32 %v127_v20, %v44_v3  ;;  %v128_v23 = vmul.f32 %v186_v21, %v112_v12 }
 0x124   :  { %131 = vst.msk [vmem:[#allocation7] sm:$0xff] %vm70_vm1, %v129_v22  ;;  %v130_v24 = vadd.f32 %v128_v23, %v45_v4 }
 0x126   :  { %132 = vst.msk [vmem:[#allocation7 + $0x8] sm:$0xff] %vm70_vm1, %v130_v24 }
 0x127   :  { %242 = shalt.err (!%p239_p6)
}
 0x128   :  { %s243_s17 = scalar_lea.hbm %s339_s3, 256 }
 0x129   :  { %p244_p7 = scmp.ne.s32.totalorder %s339_s3, %s243_s17  ;;  %p247_p8 = scmp.lt.u32.totalorder %s243_s17, %s339_s3 }
 0x12b   :  { %p249_p9 = pnand %p247_p8, %p244_p7 }
 0x12d   :  { %252 = shalt.err (!%p249_p9)
}
 0x12e   :  { %144 = dma.vmem_to_hbm [thread:$0]  %s139_s13, 256, %s339_s3, [#allocation4], %s260_s22, %s260_s22, %s261_s23  }
 0x12f   :  { %257 = dma.done.wait [#allocation4], 256  }
 0x130   :  { %258 = vsyncadd [#allocation4], 4294967040 }
 0x131   :  { %148 = vsyncpa [#allocation3], 1 }
 0x132   :  { %149 = vsyncpa [#allocation6], 1 }
 0x133   :  { %150 = vsyncpa [#allocation4], 1 }

</bundles_post_ra>
